<compile_context>
chip_gen: v5e
topology: v5e:2x2
jax: 0.10.0
libtpu: 0.0.40
codegen_flags: <defaults>
</compile_context>

<pallas_src>
import jax
import jax.numpy as jnp
from jax.experimental import pallas as pl
from jax.experimental.pallas import tpu as pltpu

T = 2                          # number of task vectors
P = 4                          # parameter blocks: W1, b1, W2, b2
B, D, H, O = 8, 32, 64, 16     # batch, in-features, hidden, out-features


# ---------------------------------------------------------------------------
# Fused kernel: primal + parameter-JVP with post-matmul coef blend
# ---------------------------------------------------------------------------
def fused_kernel(coef_ref,                 # SMEM (T, P)
                 x_ref,                    # (B, D)
                 rhs1_ref,                 # (D, (1+T)*H) = [W1t | tv1_W1t | tv2_W1t | ...]
                 b1_ref,                   # (1, H)
                 tvb1_ref,                 # (T, H)
                 w2t_ref,                  # (H, O)        W2 pre-transposed
                 rhs2_tv_ref,              # (H, T*O)      = [tv1_W2t | tv2_W2t | ...]
                 b2_ref,                   # (1, O)
                 tvb2_ref,                 # (T, O)
                 out_ref):                 # (B, O)
    Tn = tvb1_ref.shape[0]
    Hn = b1_ref.shape[1]
    On = b2_ref.shape[1]

    x = x_ref[...]                                            # (B, D)

    # ---- stage 1: ONE MXU op gives the primal pre-activation and every per-task
    #      tangent contribution; coef blend happens on (B, H) slabs, not (D, H) weights.
    hb = jnp.dot(x, rhs1_ref[...], preferred_element_type=jnp.float32)   # (B, (1+T)H)
    h0 = hb[:, :Hn] + b1_ref[...]                              # primal pre-activation

    # db1 = sum_t coef[t, 1] * tvb1[t]      (scalar FMAs on (1, H))
    db1 = coef_ref[0, 1] * tvb1_ref[pl.ds(0, 1), :]
    for t in range(1, Tn):
        db1 = db1 + coef_ref[t, 1] * tvb1_ref[pl.ds(t, 1), :]

    # dh = x @ dW1.T + db1 = sum_t coef[t, 0] * (x @ tvW1t_t) + db1
    dh = db1
    for t in range(Tn):
        dh = dh + coef_ref[t, 0] * hb[:, (1 + t) * Hn:(2 + t) * Hn]

    # ---- ReLU + its JVP (balanced-eq tie rule to match jax.jvp exactly at h0 == 0) ----
    a0 = jnp.maximum(h0, 0.0)
    da = jnp.where(h0 > 0.0, dh, jnp.where(h0 < 0.0, 0.0, 0.5 * dh))

    # ---- stage 2: (a0 + da) @ W2t covers primal + da-tangent; a0 @ [tv_W2t...] gives
    #      per-task contributions which are coef-blended on (B, O) slabs.
    y = jnp.dot(a0 + da, w2t_ref[...], preferred_element_type=jnp.float32)   # (B, O)
    z = jnp.dot(a0, rhs2_tv_ref[...], preferred_element_type=jnp.float32)    # (B, T*O)
    for t in range(Tn):
        y = y + coef_ref[t, 2] * z[:, t * On:(t + 1) * On]

    # db2 = sum_t coef[t, 3] * tvb2[t]
    db2 = coef_ref[0, 3] * tvb2_ref[pl.ds(0, 1), :]
    for t in range(1, Tn):
        db2 = db2 + coef_ref[t, 3] * tvb2_ref[pl.ds(t, 1), :]

    out_ref[...] = (y + b2_ref[...] + db2).astype(out_ref.dtype)


# ---------------------------------------------------------------------------
# One-time packing: pre-transpose weights, pack MXU-ready rhs slabs, lane-dense biases.
# (Hoisted out of the per-forward path; coef-independent, so reusable across steps.)
# ---------------------------------------------------------------------------
def prepare_inputs(params0, task_vectors):
    w1, b1, w2, b2 = params0
    w1t = jnp.asarray(w1, jnp.float32).T                        # (D, H)
    w2t = jnp.asarray(w2, jnp.float32).T                        # (H, O)
    rhs1 = jnp.concatenate(
        [w1t] + [jnp.asarray(tv[0], jnp.float32).T for tv in task_vectors], axis=1
    )                                                           # (D, (1+T)*H)
    rhs2_tv = jnp.concatenate(
        [jnp.asarray(tv[2], jnp.float32).T for tv in task_vectors], axis=1
    )                                                           # (H, T*O)
    b1r = jnp.asarray(b1, jnp.float32).reshape(1, -1)           # (1, H)
    b2r = jnp.asarray(b2, jnp.float32).reshape(1, -1)           # (1, O)
    tvb1 = jnp.stack([jnp.asarray(tv[1], jnp.float32) for tv in task_vectors])  # (T, H)
    tvb2 = jnp.stack([jnp.asarray(tv[3], jnp.float32) for tv in task_vectors])  # (T, O)
    return (rhs1, b1r, tvb1, w2t, rhs2_tv, b2r, tvb2)


# ---------------------------------------------------------------------------
# WeightedLinearizedModel.forward (blockwise=True path) -- single pallas_call
# ---------------------------------------------------------------------------
# TODO(synk): the PyTorch module's func0 is an arbitrary linearized model; it is
# instantiated here as a concrete 2-layer ReLU MLP (only blockwise=True is implemented).
def weighted_linearized_forward(x, coef, packed):
    rhs1, b1r, tvb1, w2t, rhs2_tv, b2r, tvb2 = packed
    vmem = pl.BlockSpec(memory_space=pltpu.MemorySpace.VMEM)
    smem = pl.BlockSpec(memory_space=pltpu.MemorySpace.SMEM)
    # Toy shapes: whole problem fits one VMEM-resident invocation (no grid).  When
    # scaled to a real base model, add a batch grid with dimension_semantics=("parallel",)
    # and (>=8, >=128) tiled BlockSpecs so both v7x TensorCores are used and the
    # 64 MiB v7x VMEM budget is respected.
    return pl.pallas_call(
        fused_kernel,
        out_shape=jax.ShapeDtypeStruct((x.shape[0], w2t.shape[1]), jnp.float32),
        in_specs=[smem] + [vmem] * 8,
        out_specs=vmem,
    )(coef.astype(jnp.float32), x, rhs1, b1r, tvb1, w2t, rhs2_tv, b2r, tvb2)


if __name__ == "__main__":
    key = jax.random.PRNGKey(0)
    ks = jax.random.split(key, 16)

    x = jax.random.normal(ks[0], (B, D), jnp.float32)
    w1 = jax.random.normal(ks[1], (H, D), jnp.float32) * 0.1
    b1 = jax.random.normal(ks[2], (H,), jnp.float32) * 0.1
    w2 = jax.random.normal(ks[3], (O, H), jnp.float32) * 0.1
    b2 = jax.random.normal(ks[4], (O,), jnp.float32) * 0.1
    params0 = [w1, b1, w2, b2]

    task_vectors = []
    kidx = 5
    for _t in range(T):
        tv = []
        for p in params0:
            tv.append(jax.random.normal(ks[kidx], p.shape, jnp.float32) * 0.05)
            kidx += 1
        task_vectors.append(tv)

    # The module initializes coef = zeros (it is learned later); use deterministic
    # nonzero values here so the weighted-merge + JVP path is actually exercised.
    coef = jax.random.normal(ks[kidx], (T, P), jnp.float32) * 0.5

    packed = prepare_inputs(params0, task_vectors)      # one-time prep (not per forward)
    out = weighted_linearized_forward(x, coef, packed)
    out = jax.block_until_ready(out)

    # pure-JAX reference: explicit blockwise merge + jax.jvp, identical to the PyTorch forward
    def f(params):
        W1, B1, W2, B2 = params
        h = jnp.maximum(x @ W1.T + B1, 0.0)
        return h @ W2.T + B2

    dparams_ref = tuple(
        sum(coef[t, i] * task_vectors[t][i] for t in range(T)) for i in range(P)
    )
    o_ref, dp_ref = jax.jvp(f, (tuple(params0),), (dparams_ref,))
    ref = o_ref + dp_ref

    assert out.shape == (B, O)
    assert jnp.allclose(out, ref, atol=1e-4, rtol=1e-4), float(jnp.max(jnp.abs(out - ref)))
    print("KERNEL_OK")
</pallas_src>

<mosaic_0001>
module attributes {stable_mosaic.version = 11 : i64} {
  func.func @fused_kernel(%arg0: memref<2x4xf32, #tpu.memory_space<smem>>, %arg1: memref<8x32xf32, #tpu.memory_space<vmem>>, %arg2: memref<32x192xf32, #tpu.memory_space<vmem>>, %arg3: memref<1x64xf32, #tpu.memory_space<vmem>>, %arg4: memref<2x64xf32, #tpu.memory_space<vmem>>, %arg5: memref<64x16xf32, #tpu.memory_space<vmem>>, %arg6: memref<64x32xf32, #tpu.memory_space<vmem>>, %arg7: memref<1x16xf32, #tpu.memory_space<vmem>>, %arg8: memref<2x16xf32, #tpu.memory_space<vmem>>, %arg9: memref<8x16xf32, #tpu.memory_space<vmem>>) attributes {dimension_semantics = [], scalar_prefetch = 0 : i64, scratch_operands = 0 : i64, tpu.core_type = #tpu.core_type<tc>} {
    %c0 = arith.constant 0 : index
    %c0_0 = arith.constant 0 : index
    %0 = vector.load %arg1[%c0, %c0_0] : memref<8x32xf32, #tpu.memory_space<vmem>>, vector<8x32xf32>
    %c0_1 = arith.constant 0 : index
    %c0_2 = arith.constant 0 : index
    %1 = vector.load %arg2[%c0_1, %c0_2] : memref<32x192xf32, #tpu.memory_space<vmem>>, vector<32x192xf32>
    %cst = arith.constant dense<0.000000e+00> : vector<8x192xf32>
    %2 = tpu.matmul %0, %1, %cst {dimension_numbers = #tpu.dot_dimension_numbers<[1], [0], [0], [1], [0, 0, 1, 1], [], []>} : vector<8x32xf32>, vector<32x192xf32>, vector<8x192xf32> -> vector<8x192xf32>
    %3 = vector.extract_strided_slice %2 {offsets = [0, 0], sizes = [8, 64], strides = [1, 1]} : vector<8x192xf32> to vector<8x64xf32>
    %c0_3 = arith.constant 0 : index
    %c0_4 = arith.constant 0 : index
    %4 = vector.load %arg3[%c0_3, %c0_4] : memref<1x64xf32, #tpu.memory_space<vmem>>, vector<1x64xf32>
    %5 = vector.broadcast %4 : vector<1x64xf32> to vector<8x64xf32>
    %6 = arith.addf %3, %5 : vector<8x64xf32>
    %c0_5 = arith.constant 0 : index
    %c1 = arith.constant 1 : index
    %7 = memref.load %arg0[%c0_5, %c1] : memref<2x4xf32, #tpu.memory_space<smem>>
    %c0_6 = arith.constant 0 : index
    %c0_7 = arith.constant 0 : index
    %8 = vector.load %arg4[%c0_6, %c0_7] : memref<2x64xf32, #tpu.memory_space<vmem>>, vector<1x64xf32>
    %9 = vector.broadcast %7 : f32 to vector<1x64xf32>
    %10 = arith.mulf %9, %8 : vector<1x64xf32>
    %c1_8 = arith.constant 1 : index
    %c1_9 = arith.constant 1 : index
    %11 = memref.load %arg0[%c1_8, %c1_9] : memref<2x4xf32, #tpu.memory_space<smem>>
    %c1_10 = arith.constant 1 : index
    %c0_11 = arith.constant 0 : index
    %12 = vector.load %arg4[%c1_10, %c0_11] : memref<2x64xf32, #tpu.memory_space<vmem>>, vector<1x64xf32>
    %13 = vector.broadcast %11 : f32 to vector<1x64xf32>
    %14 = arith.mulf %13, %12 : vector<1x64xf32>
    %15 = arith.addf %10, %14 : vector<1x64xf32>
    %c0_12 = arith.constant 0 : index
    %c0_13 = arith.constant 0 : index
    %16 = memref.load %arg0[%c0_12, %c0_13] : memref<2x4xf32, #tpu.memory_space<smem>>
    %17 = vector.extract_strided_slice %2 {offsets = [0, 64], sizes = [8, 64], strides = [1, 1]} : vector<8x192xf32> to vector<8x64xf32>
    %18 = vector.broadcast %16 : f32 to vector<8x64xf32>
    %19 = arith.mulf %18, %17 : vector<8x64xf32>
    %20 = vector.broadcast %15 : vector<1x64xf32> to vector<8x64xf32>
    %21 = arith.addf %20, %19 : vector<8x64xf32>
    %c1_14 = arith.constant 1 : index
    %c0_15 = arith.constant 0 : index
    %22 = memref.load %arg0[%c1_14, %c0_15] : memref<2x4xf32, #tpu.memory_space<smem>>
    %23 = vector.extract_strided_slice %2 {offsets = [0, 128], sizes = [8, 64], strides = [1, 1]} : vector<8x192xf32> to vector<8x64xf32>
    %24 = vector.broadcast %22 : f32 to vector<8x64xf32>
    %25 = arith.mulf %24, %23 : vector<8x64xf32>
    %26 = arith.addf %21, %25 : vector<8x64xf32>
    %cst_16 = arith.constant 0.000000e+00 : f32
    %27 = vector.broadcast %cst_16 : f32 to vector<8x64xf32>
    %28 = arith.maximumf %6, %27 : vector<8x64xf32>
    %cst_17 = arith.constant 0.000000e+00 : f32
    %29 = vector.broadcast %cst_17 : f32 to vector<8x64xf32>
    %30 = arith.cmpf ogt, %6, %29 : vector<8x64xf32>
    %cst_18 = arith.constant 0.000000e+00 : f32
    %31 = vector.broadcast %cst_18 : f32 to vector<8x64xf32>
    %32 = arith.cmpf olt, %6, %31 : vector<8x64xf32>
    %cst_19 = arith.constant 5.000000e-01 : f32
    %33 = vector.broadcast %cst_19 : f32 to vector<8x64xf32>
    %34 = arith.mulf %33, %26 : vector<8x64xf32>
    %cst_20 = arith.constant 0.000000e+00 : f32
    %35 = vector.broadcast %cst_20 : f32 to vector<8x64xf32>
    %36 = arith.select %32, %35, %34 : vector<8x64xi1>, vector<8x64xf32>
    %37 = arith.select %30, %26, %36 : vector<8x64xi1>, vector<8x64xf32>
    %38 = arith.addf %28, %37 : vector<8x64xf32>
    %c0_21 = arith.constant 0 : index
    %c0_22 = arith.constant 0 : index
    %39 = vector.load %arg5[%c0_21, %c0_22] : memref<64x16xf32, #tpu.memory_space<vmem>>, vector<64x16xf32>
    %cst_23 = arith.constant dense<0.000000e+00> : vector<8x16xf32>
    %40 = tpu.matmul %38, %39, %cst_23 {dimension_numbers = #tpu.dot_dimension_numbers<[1], [0], [0], [1], [0, 0, 1, 1], [], []>} : vector<8x64xf32>, vector<64x16xf32>, vector<8x16xf32> -> vector<8x16xf32>
    %c0_24 = arith.constant 0 : index
    %c0_25 = arith.constant 0 : index
    %41 = vector.load %arg6[%c0_24, %c0_25] : memref<64x32xf32, #tpu.memory_space<vmem>>, vector<64x32xf32>
    %cst_26 = arith.constant dense<0.000000e+00> : vector<8x32xf32>
    %42 = tpu.matmul %28, %41, %cst_26 {dimension_numbers = #tpu.dot_dimension_numbers<[1], [0], [0], [1], [0, 0, 1, 1], [], []>} : vector<8x64xf32>, vector<64x32xf32>, vector<8x32xf32> -> vector<8x32xf32>
    %c0_27 = arith.constant 0 : index
    %c2 = arith.constant 2 : index
    %43 = memref.load %arg0[%c0_27, %c2] : memref<2x4xf32, #tpu.memory_space<smem>>
    %44 = vector.extract_strided_slice %42 {offsets = [0, 0], sizes = [8, 16], strides = [1, 1]} : vector<8x32xf32> to vector<8x16xf32>
    %45 = vector.broadcast %43 : f32 to vector<8x16xf32>
    %46 = arith.mulf %45, %44 : vector<8x16xf32>
    %47 = arith.addf %40, %46 : vector<8x16xf32>
    %c1_28 = arith.constant 1 : index
    %c2_29 = arith.constant 2 : index
    %48 = memref.load %arg0[%c1_28, %c2_29] : memref<2x4xf32, #tpu.memory_space<smem>>
    %49 = vector.extract_strided_slice %42 {offsets = [0, 16], sizes = [8, 16], strides = [1, 1]} : vector<8x32xf32> to vector<8x16xf32>
    %50 = vector.broadcast %48 : f32 to vector<8x16xf32>
    %51 = arith.mulf %50, %49 : vector<8x16xf32>
    %52 = arith.addf %47, %51 : vector<8x16xf32>
    %c0_30 = arith.constant 0 : index
    %c3 = arith.constant 3 : index
    %53 = memref.load %arg0[%c0_30, %c3] : memref<2x4xf32, #tpu.memory_space<smem>>
    %c0_31 = arith.constant 0 : index
    %c0_32 = arith.constant 0 : index
    %54 = vector.load %arg8[%c0_31, %c0_32] : memref<2x16xf32, #tpu.memory_space<vmem>>, vector<1x16xf32>
    %55 = vector.broadcast %53 : f32 to vector<1x16xf32>
    %56 = arith.mulf %55, %54 : vector<1x16xf32>
    %c1_33 = arith.constant 1 : index
    %c3_34 = arith.constant 3 : index
    %57 = memref.load %arg0[%c1_33, %c3_34] : memref<2x4xf32, #tpu.memory_space<smem>>
    %c1_35 = arith.constant 1 : index
    %c0_36 = arith.constant 0 : index
    %58 = vector.load %arg8[%c1_35, %c0_36] : memref<2x16xf32, #tpu.memory_space<vmem>>, vector<1x16xf32>
    %59 = vector.broadcast %57 : f32 to vector<1x16xf32>
    %60 = arith.mulf %59, %58 : vector<1x16xf32>
    %61 = arith.addf %56, %60 : vector<1x16xf32>
    %c0_37 = arith.constant 0 : index
    %c0_38 = arith.constant 0 : index
    %62 = vector.load %arg7[%c0_37, %c0_38] : memref<1x16xf32, #tpu.memory_space<vmem>>, vector<1x16xf32>
    %63 = vector.broadcast %62 : vector<1x16xf32> to vector<8x16xf32>
    %64 = arith.addf %52, %63 : vector<8x16xf32>
    %65 = vector.broadcast %61 : vector<1x16xf32> to vector<8x16xf32>
    %66 = arith.addf %64, %65 : vector<8x16xf32>
    %c0_39 = arith.constant 0 : index
    %c0_40 = arith.constant 0 : index
    %67 = vector.load %arg9[%c0_39, %c0_40] : memref<8x16xf32, #tpu.memory_space<vmem>>, vector<8x16xf32>
    tpu.vector_store %arg9[%c0_39, %c0_40], %66 {strides = array<i32>} : memref<8x16xf32, #tpu.memory_space<vmem>>, vector<8x16xf32>,
    return
  }
}

</mosaic_0001>

<bundles_post_ra>
// kernel: tpu_custom_call.1
= control target key start
LH: loop header
LB: loop body
LE: loop exit
PB: predicated region body
PF: predicated region fallthrough
CT: control target
= control target key end

     0   :  { %14 = vsyncpa [#allocation4], 0  ;;  %s454_s0 = inlined_call_operand.vmem [shape: f32[2,4], index: 0, kind: input, shape index: {}]   ;;  %s455_s1 = inlined_call_operand.vmem [shape: f32[8,32], index: 1, kind: input, shape index: {}]   ;;  %s456_s2 = inlined_call_operand.vmem [shape: f32[32,192], index: 2, kind: input, shape index: {}]   ;;  %s457_s3 = inlined_call_operand.vmem [shape: f32[1,64], index: 3, kind: input, shape index: {}]   ;;  %s458_s4 = inlined_call_operand.vmem [shape: f32[2,64], index: 4, kind: input, shape index: {}]   ;;  %s459_s5 = inlined_call_operand.vmem [shape: f32[64,16], index: 5, kind: input, shape index: {}]   ;;  %s460_s6 = inlined_call_operand.vmem [shape: f32[64,32], index: 6, kind: input, shape index: {}]   ;;  %s461_s7 = inlined_call_operand.vmem [shape: f32[1,16], index: 7, kind: input, shape index: {}]   ;;  %s462_s8 = inlined_call_operand.vmem [shape: f32[2,16], index: 8, kind: input, shape index: {}]   ;;  %s463_s9 = inlined_call_operand.hbm [shape: f32[8,16], index: 9, kind: output, shape index: {}]  }
   0x1   :  { %15 = vsyncpa [#allocation3], 0  ;;  %s21_s11 = sshll.u32 %s454_s0, 4  ;;  %s299_s12 = smov [#allocation2]   ;;  %s22_s11 = int_to_ptr.vmem [resolvable:$true] %s21_s11 }
   0x2   :  { %24 = dma.vmem_to_smem %s22_s11, 32, %s299_s12, [#allocation4]  }
   0x3   :  { %295 = dma.done.wait [#allocation4], 32  }
   0x4   :  { %296 = vsyncadd [#allocation4], 4294967264 }
   0x5   :  { %45 = sfence }
   0x6   :  { %v53_v0 = vld [vmem:[%s456_s2 + $0x30] sm:$0xff]  ;;  %v51_v1 = vld [vmem:[%s456_s2 + $0x20] sm:$0xff]  ;;  %v54_v2 = vld [vmem:[%s456_s2 + $0x38] sm:$0xff]  ;;  %vm55_vm0 = vcmask 261120   ;;  %s113_s28 = sld [smem:[#allocation2]]  ;;  %vm149_vm1 = vcmask 523264  }
   0x7   :  { %71 = vmatpush.msra.mxu0 %v53_v0  ;;  %v49_v3 = vld [vmem:[%s456_s2 + $0x10] sm:$0xff]  ;;  %91 = vmatpush.msra.mxu1 %v54_v2  ;;  %v52_v4 = vld [vmem:[%s456_s2 + $0x28] sm:$0xff]  ;;  %v148_v5 = vld [vmem:[%s460_s6 + $0x38] sm:$0xff]  ;;  %s245_s0 = sld [smem:[#allocation2 + $0x81]]  ;;  %s302_s10 = smov [#allocation5]   ;;  %vm223_vm4 = vcmask 130048  }
   0x8   :  { %v50_v6 = vld [vmem:[%s456_s2 + $0x18] sm:$0xff]  ;;  %161 = vmatpush.msra.mxu2 %v148_v5  ;;  %v147_v7 = vld [vmem:[%s460_s6 + $0x30] sm:$0xff]  ;;  %v47_v8 = vld [vmem:[%s456_s2] sm:$0xff]  ;;  %s246_s22 = sld [smem:[#allocation2 + $0x80]]  ;;  %s230_s11 = sshll.u32 %s302_s10, 4  ;;  %s231_s11 = int_to_ptr.vmem [resolvable:$true] %s230_s11 }
   0x9   :  { %72 = vmatpush.msra.mxu0 %v51_v1  ;;  %92 = vmatpush.msra.mxu1 %v52_v4  ;;  %v146_v9 = vld [vmem:[%s460_s6 + $0x28] sm:$0xff]  ;;  %v46_v10 = vld [vmem:[%s455_s1] sm:$0xff]  ;;  %v144_v13 = vld [vmem:[%s460_s6 + $0x18] sm:$0xff]  ;;  %s244_s1 = sld [smem:[#allocation2 + $0x1]] }
   0xa   :  { %v48_v11 = vld [vmem:[%s456_s2 + $0x8] sm:$0xff]  ;;  %162 = vmatpush.msra.mxu2 %v147_v7  ;;  %v145_v12 = vld [vmem:[%s460_s6 + $0x20] sm:$0xff]  ;;  %v143_v14 = vld [vmem:[%s460_s6 + $0x10] sm:$0xff]  ;;  %s251_s23 = sld [smem:[#allocation2 + $0x3]] }
   0xb   :  { %73 = vmatpush.msra.mxu0 %v49_v3  ;;  %93 = vmatpush.msra.mxu1 %v50_v6  ;;  %v142_v15 = vld [vmem:[%s460_s6 + $0x8] sm:$0xff]  ;;  %v141_v16 = vld [vmem:[%s460_s6] sm:$0xff]  ;;  %v140_v17 = vld [vmem:[%s459_s5 + $0x38] sm:$0xff]  ;;  %s300_s6 = smov 64   ;;  %s252_s24 = sld [smem:[#allocation2 + $0x83]] }
   0xc   :  { %163 = vmatpush.msra.mxu2 %v146_v9  ;;  %v139_v18 = vld [vmem:[%s459_s5 + $0x30] sm:$0xff]  ;;  %187 = vmatpush.msra.mxu3 %v140_v17  ;;  %v138_v19 = vld [vmem:[%s459_s5 + $0x28] sm:$0xff]  ;;  %v257_v20 = vld [vmem:[%s457_s3] ss:$0 sm:$0xff]  ;;  %v114_v21 = vstv %s113_s28  ;;  %s248_s25 = sld [smem:[#allocation2 + $0x2]] }
   0xd   :  { %74 = vmatpush.msra.mxu0 %v47_v8  ;;  %94 = vmatpush.msra.mxu1 %v48_v11  ;;  %v137_v26 = vld [vmem:[%s459_s5 + $0x20] sm:$0xff]  ;;  %v136_v27 = vld [vmem:[%s459_s5 + $0x18] sm:$0xff]  ;;  %v135_v28 = vld [vmem:[%s459_s5 + $0x10] sm:$0xff]  ;;  %v110_v34 = vstv %s245_s0 }
   0xe   :  { %242 = vmatmul.msk.f32.vlgmr.msra.gmra.mxu0 %vm55_vm0, %v46_v10  ;;  %243 = vmatmul.msk.f32.vlgmr.msra.gmra.mxu1 %vm55_vm0, %v46_v10  ;;  %v134_v29 = vld [vmem:[%s459_s5 + $0x8] sm:$0xff]  ;;  %v133_v30 = vld [vmem:[%s459_s5] sm:$0xff]  ;;  %v123_v39 = vstv %s246_s22  ;;  %s250_s5 = sld [smem:[#allocation2 + $0x82]] }
   0xf   :  { %164 = vmatpush.msra.mxu2 %v145_v12  ;;  %188 = vmatpush.msra.mxu3 %v139_v18  ;;  %v105_v31 = vld [vmem:[%s458_s4] sm:$0x1]  ;;  %v106_v32 = vstv %s244_s1  ;;  %v109_v33 = vld [vmem:[%s458_s4 + $0x1] sm:$0x1]  ;;  %s301_s4 = smov 112  }
  0x10   :  { %v107_v35 = vmul.f32 %v106_v32, %v105_v31  ;;  %v111_v36 = vmul.f32 %v110_v34, %v109_v33  ;;  %v208_v52 = vld [vmem:[%s462_s8] sm:$0x1]  ;;  %v209_v53 = vstv %s251_s23  ;;  %v212_v54 = vld [vmem:[%s462_s8 + $0x1] sm:$0x1]  ;;  %s232_s8 = sshll.u32 %s463_s9, 4  ;;  %s233_s8 = int_to_ptr.hbm [resolvable:$true] %s232_s8 }
  0x11   :  { %165 = vmatpush.msra.mxu2 %v144_v13  ;;  %189 = vmatpush.msra.mxu3 %v138_v19  ;;  %v213_v55 = vstv %s252_s24  ;;  %v210_v56 = vmul.f32 %v209_v53, %v208_v52  ;;  %v258_v63 = vld [vmem:[%s461_s7] ss:$0 sm:$0xff] }
  0x12   :  { %v112_v37 = vadd.f32 %v111_v36, %v107_v35  ;;  %v214_v57 = vmul.f32 %v213_v55, %v212_v54  ;;  %v174_v58 = vstv %s248_s25 }
  0x13   :  { %166 = vmatpush.msra.mxu2 %v143_v14  ;;  %190 = vmatpush.msra.mxu3 %v137_v26 }
  0x14   :  { %v116_v40 = vperm.slane %v112_v37, 0  ;;  %v200_v49 = vstv %s250_s5  ;;  %v215_v60 = vadd.f32 %v214_v57, %v210_v56 }
  0x15   :  { %167 = vmatpush.msra.mxu2 %v142_v15  ;;  %191 = vmatpush.msra.mxu3 %v136_v27 }
  0x16   :  { %v221_v2 = vperm.slane %v215_v60, 0 }
  0x17   :  { %168 = vmatpush.msra.mxu2 %v141_v16  ;;  %192 = vmatpush.msra.mxu3 %v135_v28 }
  0x19   :  { %193 = vmatpush.msra.mxu3 %v134_v29 }
  0x1b   :  { %194 = vmatpush.msra.mxu3 %v133_v30 }
  0x8b   :  { %v76_v22 = vpop.f32.mrf.mxu0  ;;  %v96_v38 = vpop.f32.mrf.mxu1 }
  0x8c   :  { %v103_v23 = vadd.f32 %v257_v20, %v76_v22  ;;  %v115_v24 = vmul.f32 %v114_v21, %v76_v22  ;;  %v124_v41 = vmul.f32 %v123_v39, %v96_v38 }
  0x8e   :  { %118 = vrot.lane.b32.xlu0 %v115_v24, %s300_s6  ;;  %v126_v25 = vmax.f32 %v103_v23, 0.0  ;;  %vm128_vm2 = vcmp.lt.f32.partialorder %v103_v23, 0.0  ;;  %vm127_vm3 = vcmp.gt.f32.partialorder %v103_v23, 0.0 }
  0x90   :  { %247 = vmatmul.msk.f32.vlgmr.msra.gmra.mxu2 %vm149_vm1, %v126_v25 }
 0x100   :  { %v119_v42 = vpop.permute.xlu0 %118 }
 0x101   :  { %v121_v43 = vadd.f32 %v119_v42, %v116_v40 }
 0x103   :  { %v125_v44 = vadd.f32 %v124_v41, %v121_v43 }
 0x105   :  { %v129_v45 = vmul.f32 0.5, %v125_v44 }
 0x107   :  { %v130_v46 = vsel %vm128_vm2, 0.0, %v129_v45 }
 0x108   :  { %v131_v47 = vsel %vm127_vm3, %v125_v44, %v130_v46 }
 0x109   :  { %v132_v48 = vadd.f32 %v131_v47, %v126_v25 }
 0x10b   :  { %249 = vmatmul.msk.f32.vlgmr.msra.gmra.mxu3 %vm149_vm1, %v132_v48 }
 0x113   :  { %v170_v50 = vpop.f32.mrf.mxu2 }
 0x114   :  { %v201_v51 = vmul.f32 %v200_v49, %v170_v50  ;;  %v175_v59 = vmul.f32 %v174_v58, %v170_v50 }
 0x116   :  { %203 = vrot.lane.b32.xlu0 %v201_v51, %s301_s4 }
 0x188   :  { %v204_v0 = vpop.permute.xlu0 %203 }
 0x18e   :  { %v196_v61 = vpop.f32.mrf.mxu3 }
 0x18f   :  { %v197_v62 = vadd.f32 %v196_v61, %v175_v59 }
 0x191   :  { %v206_v1 = vadd.f32 %v204_v0, %v197_v62 }
 0x193   :  { %v220_v3 = vadd.f32 %v258_v63, %v206_v1 }
 0x195   :  { %v222_v4 = vadd.f32 %v221_v2, %v220_v3 }
 0x197   :  { %224 = vst.msk [vmem:[#allocation5] sm:$0xff] %vm223_vm4, %v222_v4 }
 0x198   :  { %235 = dma.vmem_to_hbm [thread:$0]  %s231_s11, 128, %s233_s8, [#allocation3]  }
 0x199   :  { %297 = dma.done.wait [#allocation3], 128  }
 0x19a   :  { %298 = vsyncadd [#allocation3], 4294967168 }
 0x19b   :  { %240 = vsyncpa [#allocation3], 1 }
 0x19c   :  { %241 = vsyncpa [#allocation4], 1 }

</bundles_post_ra>
